<compile_context>
chip_gen: v5e
topology: v5e:2x2
jax: 0.10.0
libtpu: 0.0.40
codegen_flags: <defaults>
</compile_context>

<pallas_src>
import functools

import jax
import jax.numpy as jnp
import numpy as np
from jax import lax
from jax.experimental import pallas as pl
from jax.experimental.pallas import tpu as pltpu


# ---------------------------------------------------------------------------
# mish with a single EUP transcendental: tanh(softplus(x)) rewritten as
# ((1+e^x)^2 - 1) / ((1+e^x)^2 + 1). Mathematically identical to F.mish.
# ---------------------------------------------------------------------------
def _mish_fast(v):
    e = jnp.exp(jnp.minimum(v, 20.0))
    n2 = (1.0 + e) * (1.0 + e)
    t = (n2 - 1.0) / (n2 + 1.0)
    return jnp.where(v > 20.0, v, v * t)


# ---------------------------------------------------------------------------
# Fused ResBlock kernel (one batch element per grid step):
#   x_next = mish( (1/J) * sum_j mish( conv1d_{K,1}( zero_pad_p2(
#               mish( conv1d_{K,d_j}(x) ) ) ) ) )
# Optionally carries the MRF running sum (sum of all previous block outputs) and, on the
# last block, emits the final MRF mean directly.
# ---------------------------------------------------------------------------
def _resblock_kernel(x_ref, w1_ref, b1_ref, w2_ref, b2_ref, *rest,
                     K, T, p2, P, dilations,
                     has_sum_in, use_input_as_sum, emit_sum, finalize, n_blocks):
    idx = 0
    s_in_ref = None
    if has_sum_in:
        s_in_ref = rest[idx]
        idx += 1
    out_ref = rest[idx]
    idx += 1
    sum_out_ref = rest[idx] if emit_sum else None

    x = x_ref[0].astype(jnp.float32)                 # (C, T)
    C = x.shape[0]
    J = len(dilations)

    # Zero-pad once in VMEM (shared by all branches / taps); all offsets are static.
    if P > 0:
        zP = jnp.zeros((C, P), jnp.float32)
        xp = jnp.concatenate([zP, x, zP], axis=1)    # (C, T + 2P)
    else:
        xp = x
    zp2 = jnp.zeros((C, p2), jnp.float32) if p2 > 0 else None

    acc = jnp.zeros((C, T), jnp.float32)
    for j, d in enumerate(dilations):
        p1 = d * (K - 1) // 2
        base = P - p1                                # static, >= 0
        # --- conv1 (dilation d): all K taps folded into ONE lane-aligned matmul -----
        x_cat = jnp.concatenate(
            [xp[:, base + k * d: base + k * d + T] for k in range(K)], axis=0)
        h = jnp.dot(w1_ref[j], x_cat, preferred_element_type=jnp.float32)
        h = _mish_fast(h + b1_ref[j])
        # conv2's zero padding applies to conv1's length-T output (PyTorch semantics).
        hp = jnp.concatenate([zp2, h, zp2], axis=1) if p2 > 0 else h   # (C, T + 2*p2)
        # --- conv2 (dilation 1): all K taps folded into ONE lane-aligned matmul -----
        h_cat = jnp.concatenate([hp[:, k: k + T] for k in range(K)], axis=0)
        y = jnp.dot(w2_ref[j], h_cat, preferred_element_type=jnp.float32)
        acc = acc + _mish_fast(y + b2_ref[j])

    # ResBlock branch mean + the MRF-level mish, fused.
    x_next = _mish_fast(acc * (1.0 / J))

    def running_sum():
        # Sum of all previous MRF block outputs (x_1 + ... + x_i).
        if use_input_as_sum:
            return x                                  # block 1: its input IS x_1
        return s_in_ref[0].astype(jnp.float32)

    if finalize:
        if n_blocks == 1:
            out_ref[0] = x_next.astype(out_ref.dtype)
        else:
            out_ref[0] = ((running_sum() + x_next) * (1.0 / n_blocks)).astype(out_ref.dtype)
    else:
        out_ref[0] = x_next.astype(out_ref.dtype)
        if emit_sum:
            sum_out_ref[0] = (running_sum() + x_next).astype(sum_out_ref.dtype)


def resblock_forward(x, w1s, b1s, w2s, b2s, dilations, *,
                     sum_in=None, use_input_as_sum=False, emit_sum=False,
                     finalize=False, n_blocks=1):
    """One fused ResBlock (incl. the MRF-level mish and optional MRF-mean fusion).

    x: (B, C, T). w1s/w2s: list of (K, C, C) per branch; b1s/b2s: list of (C,)."""
    B, C, T = x.shape
    K = int(w1s[0].shape[0])
    assert K % 2 == 1, "kernel_size must be odd (PyTorch get_padding assumption)"
    J = len(dilations)
    p2 = (K - 1) // 2
    P = max(d * (K - 1) // 2 for d in dilations)     # >= p2 since all d >= 1
    if finalize and n_blocks > 1:
        assert use_input_as_sum or (sum_in is not None)

    def flat(w):  # (K, C_out, C_in) -> (C_out, K*C_in), matching the tap concat order
        return jnp.transpose(w, (1, 0, 2)).reshape(C, K * C)

    W1 = jnp.stack([flat(w) for w in w1s], axis=0)           # (J, C, K*C)
    W2 = jnp.stack([flat(w) for w in w2s], axis=0)           # (J, C, K*C)
    B1 = jnp.stack([b.reshape(C, 1) for b in b1s], axis=0)   # (J, C, 1)
    B2 = jnp.stack([b.reshape(C, 1) for b in b2s], axis=0)   # (J, C, 1)

    has_sum_in = sum_in is not None
    kernel = functools.partial(
        _resblock_kernel, K=K, T=T, p2=p2, P=P,
        dilations=tuple(int(d) for d in dilations),
        has_sum_in=has_sum_in, use_input_as_sum=use_input_as_sum,
        emit_sum=emit_sum, finalize=finalize, n_blocks=n_blocks)

    bct_spec = pl.BlockSpec((1, C, T), lambda b: (b, 0, 0))
    in_specs = [
        bct_spec,
        pl.BlockSpec((J, C, K * C), lambda b: (0, 0, 0)),
        pl.BlockSpec((J, C, 1), lambda b: (0, 0, 0)),
        pl.BlockSpec((J, C, K * C), lambda b: (0, 0, 0)),
        pl.BlockSpec((J, C, 1), lambda b: (0, 0, 0)),
    ]
    inputs = [x, W1, B1, W2, B2]
    if has_sum_in:
        in_specs.append(bct_spec)
        inputs.append(sum_in)

    if emit_sum:
        out_shape = (jax.ShapeDtypeStruct((B, C, T), x.dtype),
                     jax.ShapeDtypeStruct((B, C, T), x.dtype))
        out_specs = (bct_spec, bct_spec)
    else:
        out_shape = jax.ShapeDtypeStruct((B, C, T), x.dtype)
        out_specs = bct_spec

    # Advisory cost estimate for the XLA scheduler.
    n_out = 2 if emit_sum else 1
    flops = 4 * B * J * K * C * C * T
    transcendentals = B * C * T * (2 * J + 1)
    bytes_accessed = 4 * (B * C * T * (1 + n_out + int(has_sum_in))
                          + 2 * J * C * (K * C + 1))

    # TODO(synk): at real HiFi-GAN scales (C=512, long T) add a T-tiling grid axis with
    # halo handling and bf16 operands so live VMEM fits the v7x 64 MiB limit.
    return pl.pallas_call(
        kernel,
        out_shape=out_shape,
        grid_spec=pltpu.PrefetchScalarGridSpec(
            num_scalar_prefetch=0,
            grid=(B,),
            in_specs=in_specs,
            out_specs=out_specs,
        ),
        compiler_params=pltpu.CompilerParams(dimension_semantics=("parallel",)),
        cost_estimate=pl.CostEstimate(flops=flops, transcendentals=transcendentals,
                                      bytes_accessed=bytes_accessed),
    )(*inputs)


# ---------------------------------------------------------------------------
# Parameter init + MRF forward (orchestration glue in plain JAX).
# ---------------------------------------------------------------------------
def init_params(key, in_channel, kernel_sizes, dilation_sizes, scale=0.1):
    params = []
    for i, K in enumerate(kernel_sizes):
        block = []
        for d in dilation_sizes[i]:
            key, k1, k2, k3, k4 = jax.random.split(key, 5)
            block.append(dict(
                w1=scale * jax.random.normal(k1, (K, in_channel, in_channel), jnp.float32),
                b1=scale * jax.random.normal(k2, (in_channel,), jnp.float32),
                w2=scale * jax.random.normal(k3, (K, in_channel, in_channel), jnp.float32),
                b2=scale * jax.random.normal(k4, (in_channel,), jnp.float32),
                dilation=d))
        params.append(block)
    return params


def mrf_forward(params, x):
    """x_{i+1} = mish(ResBlock_i(x_i)); return mean_i(x_{i+1}).

    The final mean is fused into the last ResBlock kernel via a running-sum carry."""
    n = len(params)
    sum_prev = None
    for i, block in enumerate(params):
        is_last = (i == n - 1)
        emit_sum = (i >= 1) and not is_last
        use_input_as_sum = (i == 1)
        has_sum_in = (i >= 2)
        out = resblock_forward(
            x,
            [p["w1"] for p in block], [p["b1"] for p in block],
            [p["w2"] for p in block], [p["b2"] for p in block],
            [p["dilation"] for p in block],
            sum_in=sum_prev if has_sum_in else None,
            use_input_as_sum=use_input_as_sum,
            emit_sum=emit_sum,
            finalize=is_last,
            n_blocks=n)
        if emit_sum:
            x, sum_prev = out
        else:
            x = out
    return x


# ---------------------------------------------------------------------------
# Pure-JAX reference (mirrors the PyTorch module; for correctness check only).
# ---------------------------------------------------------------------------
def _mish_ref(v):
    sp = jnp.maximum(v, 0.0) + jnp.log1p(jnp.exp(-jnp.abs(v)))
    return v * jnp.tanh(sp)


def _conv1d_ref(x, w, b, dilation):
    K = w.shape[0]
    p = dilation * (K - 1) // 2
    wr = jnp.transpose(w, (1, 2, 0))             # (C_out, C_in, K)
    y = lax.conv_general_dilated(
        x, wr, window_strides=(1,), padding=[(p, p)],
        rhs_dilation=(dilation,), dimension_numbers=("NCW", "OIW", "NCW"))
    return y + b[None, :, None]


def mrf_ref(params, x):
    blocks = []
    for block in params:
        branch = []
        for p in block:
            h = _mish_ref(_conv1d_ref(x, p["w1"], p["b1"], p["dilation"]))
            branch.append(_mish_ref(_conv1d_ref(h, p["w2"], p["b2"], 1)))
        x = _mish_ref(sum(branch) / len(branch))
        blocks.append(x)
    return sum(blocks) / len(blocks)


if __name__ == "__main__":
    B, C, T = 2, 8, 128

    key = jax.random.PRNGKey(0)
    kx, kp, kp3 = jax.random.split(key, 3)
    x = jax.random.normal(kx, (B, C, T), jnp.float32)

    # Main config: two ResBlocks (HiFi-GAN style kernel sizes / dilations).
    params = init_params(kp, C, [3, 5], [[1, 3], [1, 3]])
    out = jax.block_until_ready(mrf_forward(params, x))
    ref = jax.block_until_ready(mrf_ref(params, x))
    assert out.shape == (B, C, T)
    np.testing.assert_allclose(np.asarray(out), np.asarray(ref), rtol=2e-5, atol=2e-5)

    # Extra config: three ResBlocks (exercises the running-sum carry / fused final mean).
    params3 = init_params(kp3, C, [3, 3, 3], [[1, 2], [1, 2], [1, 2]])
    out3 = jax.block_until_ready(mrf_forward(params3, x))
    ref3 = jax.block_until_ready(mrf_ref(params3, x))
    np.testing.assert_allclose(np.asarray(out3), np.asarray(ref3), rtol=2e-5, atol=2e-5)

    print("KERNEL_OK")
</pallas_src>

<mosaic_0001>
module attributes {stable_mosaic.version = 11 : i64} {
  func.func @_resblock_kernel(%arg0: i32, %arg1: memref<1x8x128xf32, #tpu.memory_space<vmem>>, %arg2: memref<2x8x24xf32, #tpu.memory_space<vmem>>, %arg3: memref<2x8x1xf32, #tpu.memory_space<vmem>>, %arg4: memref<2x8x24xf32, #tpu.memory_space<vmem>>, %arg5: memref<2x8x1xf32, #tpu.memory_space<vmem>>, %arg6: memref<1x8x128xf32, #tpu.memory_space<vmem>>) attributes {dimension_semantics = [#tpu.dimension_semantics<parallel>], iteration_bounds = array<i64: 2>, scalar_prefetch = 0 : i64, scratch_operands = 0 : i64, tpu.core_type = #tpu.core_type<tc>, window_params = [{transform_indices = @transform_0, window_bounds = array<i64: 1, 8, 128>}, {pipeline_mode = #tpu.pipeline_mode<synchronous>, transform_indices = @transform_1, window_bounds = array<i64: 2, 8, 24>}, {pipeline_mode = #tpu.pipeline_mode<synchronous>, transform_indices = @transform_2, window_bounds = array<i64: 2, 8, 1>}, {pipeline_mode = #tpu.pipeline_mode<synchronous>, transform_indices = @transform_3, window_bounds = array<i64: 2, 8, 24>}, {pipeline_mode = #tpu.pipeline_mode<synchronous>, transform_indices = @transform_4, window_bounds = array<i64: 2, 8, 1>}, {transform_indices = @transform_5, window_bounds = array<i64: 1, 8, 128>}]} {
    %c0 = arith.constant 0 : index
    %c0_0 = arith.constant 0 : index
    %c0_1 = arith.constant 0 : index
    %0 = vector.load %arg1[%c0, %c0_0, %c0_1] : memref<1x8x128xf32, #tpu.memory_space<vmem>>, vector<1x8x128xf32>
    %1 = vector.shape_cast %0 : vector<1x8x128xf32> to vector<8x128xf32>
    %cst = arith.constant 0.000000e+00 : f32
    %2 = vector.broadcast %cst : f32 to vector<8x3xf32>
    %3 = tpu.concatenate %2, %1, %2 in 1 : vector<8x3xf32>, vector<8x128xf32>, vector<8x3xf32> -> vector<8x134xf32>
    %cst_2 = arith.constant 0.000000e+00 : f32
    %4 = vector.broadcast %cst_2 : f32 to vector<8x1xf32>
    %cst_3 = arith.constant 0.000000e+00 : f32
    %5 = vector.broadcast %cst_3 : f32 to vector<8x128xf32>
    %6 = vector.extract_strided_slice %3 {offsets = [0, 2], sizes = [8, 128], strides = [1, 1]} : vector<8x134xf32> to vector<8x128xf32>
    %7 = vector.extract_strided_slice %3 {offsets = [0, 3], sizes = [8, 128], strides = [1, 1]} : vector<8x134xf32> to vector<8x128xf32>
    %8 = vector.extract_strided_slice %3 {offsets = [0, 4], sizes = [8, 128], strides = [1, 1]} : vector<8x134xf32> to vector<8x128xf32>
    %9 = tpu.concatenate %6, %7, %8 in 0 : vector<8x128xf32>, vector<8x128xf32>, vector<8x128xf32> -> vector<24x128xf32>
    %c0_4 = arith.constant 0 : index
    %c0_5 = arith.constant 0 : index
    %c0_6 = arith.constant 0 : index
    %10 = vector.load %arg2[%c0_4, %c0_5, %c0_6] : memref<2x8x24xf32, #tpu.memory_space<vmem>>, vector<1x8x24xf32>
    %11 = vector.shape_cast %10 : vector<1x8x24xf32> to vector<8x24xf32>
    %cst_7 = arith.constant dense<0.000000e+00> : vector<8x128xf32>
    %12 = tpu.matmul %11, %9, %cst_7 {dimension_numbers = #tpu.dot_dimension_numbers<[1], [0], [0], [1], [0, 0, 1, 1], [], []>} : vector<8x24xf32>, vector<24x128xf32>, vector<8x128xf32> -> vector<8x128xf32>
    %c0_8 = arith.constant 0 : index
    %c0_9 = arith.constant 0 : index
    %c0_10 = arith.constant 0 : index
    %13 = vector.load %arg3[%c0_8, %c0_9, %c0_10] : memref<2x8x1xf32, #tpu.memory_space<vmem>>, vector<1x8x1xf32>
    %14 = vector.shape_cast %13 : vector<1x8x1xf32> to vector<8x1xf32>
    %15 = vector.broadcast %14 : vector<8x1xf32> to vector<8x128xf32>
    %16 = arith.addf %12, %15 : vector<8x128xf32>
    %cst_11 = arith.constant 2.000000e+01 : f32
    %17 = vector.broadcast %cst_11 : f32 to vector<8x128xf32>
    %18 = arith.minimumf %16, %17 : vector<8x128xf32>
    %19 = math.exp %18 : vector<8x128xf32>
    %cst_12 = arith.constant 1.000000e+00 : f32
    %20 = vector.broadcast %cst_12 : f32 to vector<8x128xf32>
    %21 = arith.addf %20, %19 : vector<8x128xf32>
    %cst_13 = arith.constant 1.000000e+00 : f32
    %22 = vector.broadcast %cst_13 : f32 to vector<8x128xf32>
    %23 = arith.addf %22, %19 : vector<8x128xf32>
    %24 = arith.mulf %21, %23 : vector<8x128xf32>
    %cst_14 = arith.constant 1.000000e+00 : f32
    %25 = vector.broadcast %cst_14 : f32 to vector<8x128xf32>
    %26 = arith.subf %24, %25 : vector<8x128xf32>
    %cst_15 = arith.constant 1.000000e+00 : f32
    %27 = vector.broadcast %cst_15 : f32 to vector<8x128xf32>
    %28 = arith.addf %24, %27 : vector<8x128xf32>
    %29 = arith.divf %26, %28 : vector<8x128xf32>
    %cst_16 = arith.constant 2.000000e+01 : f32
    %30 = vector.broadcast %cst_16 : f32 to vector<8x128xf32>
    %31 = arith.cmpf ogt, %16, %30 : vector<8x128xf32>
    %32 = arith.mulf %16, %29 : vector<8x128xf32>
    %33 = arith.select %31, %16, %32 : vector<8x128xi1>, vector<8x128xf32>
    %34 = tpu.concatenate %4, %33, %4 in 1 : vector<8x1xf32>, vector<8x128xf32>, vector<8x1xf32> -> vector<8x130xf32>
    %35 = vector.extract_strided_slice %34 {offsets = [0, 0], sizes = [8, 128], strides = [1, 1]} : vector<8x130xf32> to vector<8x128xf32>
    %36 = vector.extract_strided_slice %34 {offsets = [0, 1], sizes = [8, 128], strides = [1, 1]} : vector<8x130xf32> to vector<8x128xf32>
    %37 = vector.extract_strided_slice %34 {offsets = [0, 2], sizes = [8, 128], strides = [1, 1]} : vector<8x130xf32> to vector<8x128xf32>
    %38 = tpu.concatenate %35, %36, %37 in 0 : vector<8x128xf32>, vector<8x128xf32>, vector<8x128xf32> -> vector<24x128xf32>
    %c0_17 = arith.constant 0 : index
    %c0_18 = arith.constant 0 : index
    %c0_19 = arith.constant 0 : index
    %39 = vector.load %arg4[%c0_17, %c0_18, %c0_19] : memref<2x8x24xf32, #tpu.memory_space<vmem>>, vector<1x8x24xf32>
    %40 = vector.shape_cast %39 : vector<1x8x24xf32> to vector<8x24xf32>
    %cst_20 = arith.constant dense<0.000000e+00> : vector<8x128xf32>
    %41 = tpu.matmul %40, %38, %cst_20 {dimension_numbers = #tpu.dot_dimension_numbers<[1], [0], [0], [1], [0, 0, 1, 1], [], []>} : vector<8x24xf32>, vector<24x128xf32>, vector<8x128xf32> -> vector<8x128xf32>
    %c0_21 = arith.constant 0 : index
    %c0_22 = arith.constant 0 : index
    %c0_23 = arith.constant 0 : index
    %42 = vector.load %arg5[%c0_21, %c0_22, %c0_23] : memref<2x8x1xf32, #tpu.memory_space<vmem>>, vector<1x8x1xf32>
    %43 = vector.shape_cast %42 : vector<1x8x1xf32> to vector<8x1xf32>
    %44 = vector.broadcast %43 : vector<8x1xf32> to vector<8x128xf32>
    %45 = arith.addf %41, %44 : vector<8x128xf32>
    %cst_24 = arith.constant 2.000000e+01 : f32
    %46 = vector.broadcast %cst_24 : f32 to vector<8x128xf32>
    %47 = arith.minimumf %45, %46 : vector<8x128xf32>
    %48 = math.exp %47 : vector<8x128xf32>
    %cst_25 = arith.constant 1.000000e+00 : f32
    %49 = vector.broadcast %cst_25 : f32 to vector<8x128xf32>
    %50 = arith.addf %49, %48 : vector<8x128xf32>
    %cst_26 = arith.constant 1.000000e+00 : f32
    %51 = vector.broadcast %cst_26 : f32 to vector<8x128xf32>
    %52 = arith.addf %51, %48 : vector<8x128xf32>
    %53 = arith.mulf %50, %52 : vector<8x128xf32>
    %cst_27 = arith.constant 1.000000e+00 : f32
    %54 = vector.broadcast %cst_27 : f32 to vector<8x128xf32>
    %55 = arith.subf %53, %54 : vector<8x128xf32>
    %cst_28 = arith.constant 1.000000e+00 : f32
    %56 = vector.broadcast %cst_28 : f32 to vector<8x128xf32>
    %57 = arith.addf %53, %56 : vector<8x128xf32>
    %58 = arith.divf %55, %57 : vector<8x128xf32>
    %cst_29 = arith.constant 2.000000e+01 : f32
    %59 = vector.broadcast %cst_29 : f32 to vector<8x128xf32>
    %60 = arith.cmpf ogt, %45, %59 : vector<8x128xf32>
    %61 = arith.mulf %45, %58 : vector<8x128xf32>
    %62 = arith.select %60, %45, %61 : vector<8x128xi1>, vector<8x128xf32>
    %63 = arith.addf %5, %62 : vector<8x128xf32>
    %64 = vector.extract_strided_slice %3 {offsets = [0, 0], sizes = [8, 128], strides = [1, 1]} : vector<8x134xf32> to vector<8x128xf32>
    %65 = vector.extract_strided_slice %3 {offsets = [0, 3], sizes = [8, 128], strides = [1, 1]} : vector<8x134xf32> to vector<8x128xf32>
    %66 = vector.extract_strided_slice %3 {offsets = [0, 6], sizes = [8, 128], strides = [1, 1]} : vector<8x134xf32> to vector<8x128xf32>
    %67 = tpu.concatenate %64, %65, %66 in 0 : vector<8x128xf32>, vector<8x128xf32>, vector<8x128xf32> -> vector<24x128xf32>
    %c1 = arith.constant 1 : index
    %c0_30 = arith.constant 0 : index
    %c0_31 = arith.constant 0 : index
    %68 = vector.load %arg2[%c1, %c0_30, %c0_31] : memref<2x8x24xf32, #tpu.memory_space<vmem>>, vector<1x8x24xf32>
    %69 = vector.shape_cast %68 : vector<1x8x24xf32> to vector<8x24xf32>
    %cst_32 = arith.constant dense<0.000000e+00> : vector<8x128xf32>
    %70 = tpu.matmul %69, %67, %cst_32 {dimension_numbers = #tpu.dot_dimension_numbers<[1], [0], [0], [1], [0, 0, 1, 1], [], []>} : vector<8x24xf32>, vector<24x128xf32>, vector<8x128xf32> -> vector<8x128xf32>
    %c1_33 = arith.constant 1 : index
    %c0_34 = arith.constant 0 : index
    %c0_35 = arith.constant 0 : index
    %71 = vector.load %arg3[%c1_33, %c0_34, %c0_35] : memref<2x8x1xf32, #tpu.memory_space<vmem>>, vector<1x8x1xf32>
    %72 = vector.shape_cast %71 : vector<1x8x1xf32> to vector<8x1xf32>
    %73 = vector.broadcast %72 : vector<8x1xf32> to vector<8x128xf32>
    %74 = arith.addf %70, %73 : vector<8x128xf32>
    %cst_36 = arith.constant 2.000000e+01 : f32
    %75 = vector.broadcast %cst_36 : f32 to vector<8x128xf32>
    %76 = arith.minimumf %74, %75 : vector<8x128xf32>
    %77 = math.exp %76 : vector<8x128xf32>
    %cst_37 = arith.constant 1.000000e+00 : f32
    %78 = vector.broadcast %cst_37 : f32 to vector<8x128xf32>
    %79 = arith.addf %78, %77 : vector<8x128xf32>
    %cst_38 = arith.constant 1.000000e+00 : f32
    %80 = vector.broadcast %cst_38 : f32 to vector<8x128xf32>
    %81 = arith.addf %80, %77 : vector<8x128xf32>
    %82 = arith.mulf %79, %81 : vector<8x128xf32>
    %cst_39 = arith.constant 1.000000e+00 : f32
    %83 = vector.broadcast %cst_39 : f32 to vector<8x128xf32>
    %84 = arith.subf %82, %83 : vector<8x128xf32>
    %cst_40 = arith.constant 1.000000e+00 : f32
    %85 = vector.broadcast %cst_40 : f32 to vector<8x128xf32>
    %86 = arith.addf %82, %85 : vector<8x128xf32>
    %87 = arith.divf %84, %86 : vector<8x128xf32>
    %cst_41 = arith.constant 2.000000e+01 : f32
    %88 = vector.broadcast %cst_41 : f32 to vector<8x128xf32>
    %89 = arith.cmpf ogt, %74, %88 : vector<8x128xf32>
    %90 = arith.mulf %74, %87 : vector<8x128xf32>
    %91 = arith.select %89, %74, %90 : vector<8x128xi1>, vector<8x128xf32>
    %92 = tpu.concatenate %4, %91, %4 in 1 : vector<8x1xf32>, vector<8x128xf32>, vector<8x1xf32> -> vector<8x130xf32>
    %93 = vector.extract_strided_slice %92 {offsets = [0, 0], sizes = [8, 128], strides = [1, 1]} : vector<8x130xf32> to vector<8x128xf32>
    %94 = vector.extract_strided_slice %92 {offsets = [0, 1], sizes = [8, 128], strides = [1, 1]} : vector<8x130xf32> to vector<8x128xf32>
    %95 = vector.extract_strided_slice %92 {offsets = [0, 2], sizes = [8, 128], strides = [1, 1]} : vector<8x130xf32> to vector<8x128xf32>
    %96 = tpu.concatenate %93, %94, %95 in 0 : vector<8x128xf32>, vector<8x128xf32>, vector<8x128xf32> -> vector<24x128xf32>
    %c1_42 = arith.constant 1 : index
    %c0_43 = arith.constant 0 : index
    %c0_44 = arith.constant 0 : index
    %97 = vector.load %arg4[%c1_42, %c0_43, %c0_44] : memref<2x8x24xf32, #tpu.memory_space<vmem>>, vector<1x8x24xf32>
    %98 = vector.shape_cast %97 : vector<1x8x24xf32> to vector<8x24xf32>
    %cst_45 = arith.constant dense<0.000000e+00> : vector<8x128xf32>
    %99 = tpu.matmul %98, %96, %cst_45 {dimension_numbers = #tpu.dot_dimension_numbers<[1], [0], [0], [1], [0, 0, 1, 1], [], []>} : vector<8x24xf32>, vector<24x128xf32>, vector<8x128xf32> -> vector<8x128xf32>
    %c1_46 = arith.constant 1 : index
    %c0_47 = arith.constant 0 : index
    %c0_48 = arith.constant 0 : index
    %100 = vector.load %arg5[%c1_46, %c0_47, %c0_48] : memref<2x8x1xf32, #tpu.memory_space<vmem>>, vector<1x8x1xf32>
    %101 = vector.shape_cast %100 : vector<1x8x1xf32> to vector<8x1xf32>
    %102 = vector.broadcast %101 : vector<8x1xf32> to vector<8x128xf32>
    %103 = arith.addf %99, %102 : vector<8x128xf32>
    %cst_49 = arith.constant 2.000000e+01 : f32
    %104 = vector.broadcast %cst_49 : f32 to vector<8x128xf32>
    %105 = arith.minimumf %103, %104 : vector<8x128xf32>
    %106 = math.exp %105 : vector<8x128xf32>
    %cst_50 = arith.constant 1.000000e+00 : f32
    %107 = vector.broadcast %cst_50 : f32 to vector<8x128xf32>
    %108 = arith.addf %107, %106 : vector<8x128xf32>
    %cst_51 = arith.constant 1.000000e+00 : f32
    %109 = vector.broadcast %cst_51 : f32 to vector<8x128xf32>
    %110 = arith.addf %109, %106 : vector<8x128xf32>
    %111 = arith.mulf %108, %110 : vector<8x128xf32>
    %cst_52 = arith.constant 1.000000e+00 : f32
    %112 = vector.broadcast %cst_52 : f32 to vector<8x128xf32>
    %113 = arith.subf %111, %112 : vector<8x128xf32>
    %cst_53 = arith.constant 1.000000e+00 : f32
    %114 = vector.broadcast %cst_53 : f32 to vector<8x128xf32>
    %115 = arith.addf %111, %114 : vector<8x128xf32>
    %116 = arith.divf %113, %115 : vector<8x128xf32>
    %cst_54 = arith.constant 2.000000e+01 : f32
    %117 = vector.broadcast %cst_54 : f32 to vector<8x128xf32>
    %118 = arith.cmpf ogt, %103, %117 : vector<8x128xf32>
    %119 = arith.mulf %103, %116 : vector<8x128xf32>
    %120 = arith.select %118, %103, %119 : vector<8x128xi1>, vector<8x128xf32>
    %121 = arith.addf %63, %120 : vector<8x128xf32>
    %cst_55 = arith.constant 5.000000e-01 : f32
    %122 = vector.broadcast %cst_55 : f32 to vector<8x128xf32>
    %123 = arith.mulf %121, %122 : vector<8x128xf32>
    %cst_56 = arith.constant 2.000000e+01 : f32
    %124 = vector.broadcast %cst_56 : f32 to vector<8x128xf32>
    %125 = arith.minimumf %123, %124 : vector<8x128xf32>
    %126 = math.exp %125 : vector<8x128xf32>
    %cst_57 = arith.constant 1.000000e+00 : f32
    %127 = vector.broadcast %cst_57 : f32 to vector<8x128xf32>
    %128 = arith.addf %127, %126 : vector<8x128xf32>
    %cst_58 = arith.constant 1.000000e+00 : f32
    %129 = vector.broadcast %cst_58 : f32 to vector<8x128xf32>
    %130 = arith.addf %129, %126 : vector<8x128xf32>
    %131 = arith.mulf %128, %130 : vector<8x128xf32>
    %cst_59 = arith.constant 1.000000e+00 : f32
    %132 = vector.broadcast %cst_59 : f32 to vector<8x128xf32>
    %133 = arith.subf %131, %132 : vector<8x128xf32>
    %cst_60 = arith.constant 1.000000e+00 : f32
    %134 = vector.broadcast %cst_60 : f32 to vector<8x128xf32>
    %135 = arith.addf %131, %134 : vector<8x128xf32>
    %136 = arith.divf %133, %135 : vector<8x128xf32>
    %cst_61 = arith.constant 2.000000e+01 : f32
    %137 = vector.broadcast %cst_61 : f32 to vector<8x128xf32>
    %138 = arith.cmpf ogt, %123, %137 : vector<8x128xf32>
    %139 = arith.mulf %123, %136 : vector<8x128xf32>
    %140 = arith.select %138, %123, %139 : vector<8x128xi1>, vector<8x128xf32>
    %c0_62 = arith.constant 0 : index
    %c0_63 = arith.constant 0 : index
    %c0_64 = arith.constant 0 : index
    %141 = vector.load %arg6[%c0_62, %c0_63, %c0_64] : memref<1x8x128xf32, #tpu.memory_space<vmem>>, vector<1x8x128xf32>
    %142 = vector.shape_cast %141 : vector<1x8x128xf32> to vector<8x128xf32>
    %143 = vector.shape_cast %140 : vector<8x128xf32> to vector<1x8x128xf32>
    tpu.vector_store %arg6[%c0_62, %c0_63, %c0_64], %143 {strides = array<i32>} : memref<1x8x128xf32, #tpu.memory_space<vmem>>, vector<1x8x128xf32>,
    return
  }
  func.func @transform_0(%arg0: i32) -> (i32, i32, i32) {
    %c0_i32 = arith.constant 0 : i32
    %c0_i32_0 = arith.constant 0 : i32
    %c0_i32_1 = arith.constant 0 : i32
    return %arg0, %c0_i32, %c0_i32_0 : i32, i32, i32
  }
  func.func @transform_1(%arg0: i32) -> (i32, i32, i32) {
    %c0_i32 = arith.constant 0 : i32
    %c0_i32_0 = arith.constant 0 : i32
    %c0_i32_1 = arith.constant 0 : i32
    %c0_i32_2 = arith.constant 0 : i32
    return %c0_i32, %c0_i32_0, %c0_i32_1 : i32, i32, i32
  }
  func.func @transform_2(%arg0: i32) -> (i32, i32, i32) {
    %c0_i32 = arith.constant 0 : i32
    %c0_i32_0 = arith.constant 0 : i32
    %c0_i32_1 = arith.constant 0 : i32
    %c0_i32_2 = arith.constant 0 : i32
    return %c0_i32, %c0_i32_0, %c0_i32_1 : i32, i32, i32
  }
  func.func @transform_3(%arg0: i32) -> (i32, i32, i32) {
    %c0_i32 = arith.constant 0 : i32
    %c0_i32_0 = arith.constant 0 : i32
    %c0_i32_1 = arith.constant 0 : i32
    %c0_i32_2 = arith.constant 0 : i32
    return %c0_i32, %c0_i32_0, %c0_i32_1 : i32, i32, i32
  }
  func.func @transform_4(%arg0: i32) -> (i32, i32, i32) {
    %c0_i32 = arith.constant 0 : i32
    %c0_i32_0 = arith.constant 0 : i32
    %c0_i32_1 = arith.constant 0 : i32
    %c0_i32_2 = arith.constant 0 : i32
    return %c0_i32, %c0_i32_0, %c0_i32_1 : i32, i32, i32
  }
  func.func @transform_5(%arg0: i32) -> (i32, i32, i32) {
    %c0_i32 = arith.constant 0 : i32
    %c0_i32_0 = arith.constant 0 : i32
    %c0_i32_1 = arith.constant 0 : i32
    return %arg0, %c0_i32, %c0_i32_0 : i32, i32, i32
  }
}

</mosaic_0001>

<bundles_post_ra>
// kernel: tpu_custom_call.1
= control target key start
LH: loop header
LB: loop body
LE: loop exit
PB: predicated region body
PF: predicated region fallthrough
CT: control target
= control target key end

     0   :  { %10 = vsyncpa [#allocation3], 0  ;;  %s1119_s0 = inlined_call_operand.vmem [shape: f32[2,8,128], index: 0, kind: input, shape index: {}]   ;;  %s1120_s1 = inlined_call_operand.vmem [shape: f32[2,8,24], index: 1, kind: input, shape index: {}]   ;;  %s1121_s2 = inlined_call_operand.vmem [shape: f32[2,8,1], index: 2, kind: input, shape index: {}]   ;;  %s1122_s3 = inlined_call_operand.hbm [shape: f32[2,8,24], index: 3, kind: input, shape index: {}]   ;;  %s1123_s4 = inlined_call_operand.vmem [shape: f32[2,8,1], index: 4, kind: input, shape index: {}]   ;;  %s1124_s5 = inlined_call_operand.hbm [shape: f32[2,8,128], index: 5, kind: output, shape index: {}]  }
   0x1   :  { %11 = vsyncpa [#allocation4], 0 }
   0x2   :  { %13 = vsyncpa [#allocation4 + $0x1], 0  ;;  %s968_s18 = smov 0   ;;  %s970_s19 = smov 0  }
   0x3   :  { %s972_s20 = smov 0   ;;  %s974_s21 = smov 0  }
   0x4 LB: > { %s989_s22 = sadd.s32 4294967295, %s926_s21   ;;  %s668_s23 = sadd.s32 4294967294, %s926_s21   ;;  %s926_s21 = sphi %s974_s21, %s1132_s21   ;;  %s922_s20 = sphi %s972_s20, %s1131_s20   ;;  %s918_s19 = sphi %s970_s19, %s1130_s19   ;;  %s914_s18 = sphi %s968_s18, %s1129_s18  }
   0x5   : > { %s993_s24 = sadd.s32 1, %s926_s21   ;;  %s136_s25 = sadd.s32 1, %s922_s20 }
   0x6   : > { %s133_s26 = ssub.s32 %s926_s21, %s993_s24  ;;  %p146_p0 = scmp.ne.s32.totalorder %s922_s20, %s918_s19 }
   0x7   : > { %p134_p1 = scmp.eq.s32.totalorder %s133_s26, 0  ;;  %p147_p2 = scmp.eq.s32.totalorder %s989_s22, 1 }
   0x8   : > { %p152_p3 = scmp.ne.s32.totalorder %s918_s19, %s914_s18  ;;  %p153_p4 = scmp.eq.s32.totalorder %s668_s23, 1 }
   0x9   : > { %s1004_s27 = scalar_select %p134_p1, %s922_s20, %s136_s25  }
   0xa   : > { %p1006_p5 = por %p147_p2, %p146_p0  ;;  %p1010_p6 = por %p153_p4, %p152_p3 }
   0xb   : > { %p669_p7 = scmp.ge.s32.totalorder %s926_s21, 1  ;;  %p160_p8 = scmp.lt.s32.totalorder %s926_s21, 3 }
   0xc   : > { %p712_p9 = scmp.eq.s32.totalorder %s989_s22, 0  ;;  %s177_s7 = sshll.u32 %s1122_s3, 4  ;;  %s178_s7 = int_to_ptr.hbm [resolvable:$true] %s177_s7 }
   0xd   : > { %p161_p10 = pnand %p669_p7, %p160_p8  ;;  %s928_s8 = smov [#allocation2]  }
   0xe   : > { %s179_s9 = sshll.u32 %s928_s8, 4  ;;  %s929_s10 = smov 128   ;;  %s180_s9 = int_to_ptr.vmem [resolvable:$true] %s179_s9 }
   0xf   : > { %p704_p11 = pneg %p161_p10  ;;  %s930_s11 = smov 8  }
  0x10   : > { %205 = sbr.rel (%p161_p10) target bundleno = 1009 (0x3f1), region = 40 }
  0x11   : > { %p705_p12 = pnand %p712_p9, %p704_p11 }
  0x13   : > { %707 = dma.hbm_to_vmem [thread:$0]  (!%p705_p12), %s178_s7, 256, %s180_s9, [#allocation3], %s929_s10, %s929_s10, %s930_s11  }
  0x15   : > { %905 = dma.done.wait (%p712_p9), [#allocation3], 256  }
  0x16   : > { %907 = vsyncadd (%p712_p9), [#allocation3], 4294967040  ;;  %p233_p13 = scmp.lt.s32.totalorder %s989_s22, 1  ;;  %s931_s17 = smov 3   ;;  %vm242_vm0 = vcmask 23552   ;;  %v683_v5 = vld [vmem:[%s1121_s2 + $0x8] sm:$0xff] }
  0x17   : > { %s932_s23 = smov 125   ;;  %s933_s25 = smov 127   ;;  %v936_v6 = vmov 0   ;;  %vm251_vm1 = vcmask 1039360   ;;  %vm257_vm2 = vcmask 1031168   ;;  %vm416_vm3 = vcmask 998400   ;;  %vm684_vm5 = vmneg %vm242_vm0 }
  0x18   : > { %s234_s12 = scalar_select %p233_p13, %s989_s22, 1  ;;  %787 = vset.pattern.permute.xlu1 %v936_v6  ;;  %788 = vset.pattern.permute.xlu2 %v936_v6  ;;  %vm409_vm4 = vcmask 1022976   ;;  %vm279_vm6 = vcmask 195584   ;;  %v682_v25 = vld [vmem:[%s1120_s1 + $0x8] sm:$0xff]  ;;  %v259_v34 = vld [vmem:[%s1120_s1] sm:$0xff] }
  0x19   : > { %s934_s26 = smov 126   ;;  %s935_s30 = smov 122   ;;  %809 = vset.pattern.permute.xlu0 %v936_v6  ;;  %v260_v35 = vld [vmem:[%s1121_s2] sm:$0xff] }
  0x1a   : > { %s675_s13 = sshll.u32 %s234_s12, 3  ;;  %s937_s14 = smov 1  }
  0x1b   : > { %s236_s16 = scalar_lea.vmem %s1119_s0, %s675_s13 }
  0x1c   : > { %v237_v0 = vld [vmem:[%s236_s16] sm:$0xff]  ;;  %s880_s16 = scalar_lea.hbm %s1124_s5, 16 }
  0x1d   : > { %239 = vrot.lane.b32.xlu0 %v237_v0, %s931_s17 }
  0x8f   : > { %v240_v1 = vpop.permute.xlu0 %239 }
  0x90   : > { %v243_v2 = vsel %vm242_vm0, 0.0, %v240_v1  ;;  %v244_v3 = vsel %vm242_vm0, %v240_v1, 0.0 }
  0x91   : > { %v772_v4 = vpack.i.bf16 %v244_v3, %v243_v2 }
  0x93   : > { %773 = vrot.lane.b32.xlu2 %v772_v4, %s932_s23  ;;  %763 = vrot.lane.b32.xlu1 %v772_v4, %s933_s25 }
  0x94   : > { %758 = vrot.lane.b32.xlu0 %v772_v4, %s934_s26 }
  0x9b   : > { %768 = vrot.lane.b32.xlu1 %v772_v4, %s935_s30  ;;  %s695_s30 = sshll.u32 %s989_s22, 3 }
  0x9c   : > { %s592_s8 = scalar_lea.hbm %s1124_s5, %s695_s30 }
  0x9d   : > { %s596_s11 = sshll.u32 %s592_s8, 4  ;;  %s597_s11 = int_to_ptr.hbm [resolvable:$true] %s596_s11 }
  0x9e   : > { %s874_s12 = sshra.s32 %s597_s11, 4  ;;  %s875_s12 = int_to_ptr.hbm [resolvable:$true] %s874_s12 }
  0x9f   : > { %s876_s13 = scalar_lea.hbm %s875_s12, 8  ;;  %p881_p3 = scmp.lt.s32.totalorder %s875_s12, %s1124_s5 }
  0xa0   : > { %p877_p0 = scmp.ne.s32.totalorder %s875_s12, %s876_s13  ;;  %p882_p4 = scmp.lt.s32.totalorder %s880_s16, %s876_s13 }
  0xa2   : > { %p878_p1 = pnand %p877_p0, %p1006_p5  ;;  %p883_p7 = por %p882_p4, %p881_p3 }
  0xa3   : > { %425 = vperm.xlu1 %787, %v683_v5  }
  0xa4   : > { %p879_p2 = pneg %p878_p1 }
  0xa6   : > { %p884_p8 = pnand %p883_p7, %p879_p2 }
  0xed   : > { %v774_v17 = vpop.permute.xlu2 %773 }
  0xee   : > { %v776_v19 = vunpack.i.h.bf16 %v774_v17  ;;  %v775_v20 = vunpack.i.l.bf16 %v774_v17 }
  0xf0   : > { %v410_v24 = vsel %vm409_vm4, %v775_v20, %v776_v19 }
 0x105   : > { %v764_v7 = vpop.permute.xlu1 %763 }
 0x106   : > { %v766_v8 = vunpack.i.h.bf16 %v764_v7  ;;  %v765_v9 = vunpack.i.l.bf16 %v764_v7  ;;  %v759_v10 = vpop.permute.xlu0 %758 }
 0x107   : > { %v761_v11 = vunpack.i.h.bf16 %v759_v10  ;;  %v760_v12 = vunpack.i.l.bf16 %v759_v10 }
 0x108   : > { %v252_v13 = vsel %vm251_vm1, %v765_v9, %v766_v8 }
 0x109   : > { %v782_v14 = vpack.i.bf16 %v766_v8, %v252_v13  ;;  %v258_v15 = vsel %vm257_vm2, %v760_v12, %v761_v11 }
 0x10a   : > { %v777_v16 = vpack.i.bf16 %v761_v11, %v258_v15 }
 0x10b   : > { %783 = vrot.lane.b32.xlu0 %v782_v14, %s934_s26 }
 0x10c   : > { %778 = vrot.lane.b32.xlu2 %v777_v16, %s934_s26 }
 0x10d   : > { %v769_v18 = vpop.permute.xlu1 %768 }
 0x10e   : > { %v771_v21 = vunpack.i.h.bf16 %v769_v18  ;;  %v770_v22 = vunpack.i.l.bf16 %v769_v18 }
 0x110   : > { %v417_v23 = vsel %vm416_vm3, %v770_v22, %v771_v21  ;;  %vm332_vm3 = vcmask 7168  }
 0x111   : > { %444 = vmatpush.msra.mxu2 %v417_v23  ;;  %vm1072_vm4 = vmneg %vm332_vm3 }
 0x113   : > { %445 = vmatpush.msra.mxu2 %v410_v24 }
 0x114   : > { %263 = vperm.xlu2 %788, %v260_v35  }
 0x115   : > { %685 = vmatpush.msk.msra.mxu2 %vm684_vm5, %v240_v1  ;;  %v426_v36 = vpop.permute.xlu1 %425 }
 0x116   : > { %686 = vmatmul.msk.f32.vlgmr.msra.gmra.mxu2 %vm279_vm6, %v682_v25 }
 0x166   : > { %v779_v26 = vpop.permute.xlu2 %778 }
 0x167   : > { %v781_v27 = vunpack.i.h.bf16 %v779_v26  ;;  %v780_v28 = vunpack.i.l.bf16 %v779_v26 }
 0x169   : > { %v275_v29 = vsel %vm257_vm2, %v780_v28, %v781_v27 }
 0x16a   : > { %296 = vmatpush.msra.mxu0 %v275_v29 }
 0x16e   : > { %v264_v59 = vpop.permute.xlu2 %263 }
 0x17d   : > { %v784_v30 = vpop.permute.xlu0 %783 }
 0x17e   : > { %v786_v31 = vunpack.i.h.bf16 %v784_v30  ;;  %v785_v32 = vunpack.i.l.bf16 %v784_v30  ;;  %v688_v30 = vld [vmem:[%s1123_s4 + $0x8] sm:$0xff] }
 0x180   : > { %v274_v33 = vsel %vm257_vm2, %v785_v32, %v786_v31 }
 0x181   : > { %297 = vmatpush.msra.mxu0 %v274_v33 }
 0x183   : > { %298 = vmatpush.msra.mxu0 %v258_v15 }
 0x184   : > { %676 = vmatmul.msk.f32.vlgmr.msra.gmra.mxu0 %vm279_vm6, %v259_v34 }
 0x199   : > { %v448_v37 = vpop.f32.mrf.mxu2 }
 0x19a   : > { %v449_v38 = vadd.f32 %v448_v37, %v426_v36  ;;  %v497_v36 = vld [vmem:[#allocation2 + $0x8] sm:$0xff]  ;;  %v350_v37 = vld [vmem:[%s1123_s4] sm:$0xff] }
 0x19c   : > { %v451_v39 = vmin.f32 %v449_v38, 20.0  ;;  %vm473_vm11 = vcmp.gt.f32.partialorder %v449_v38, 20.0 }
 0x19e   : > { %v452_v40 = vmul.f32 1.442695, %v451_v39 }
 0x1a0   : > { %810 = vpow2.f32 %v452_v40 }
 0x1a6   : > { %v811_v41 = vpop.eup %810 }
 0x1a7   : > { %v454_v42 = vadd.f32 1.0, %v811_v41 }
 0x1a9   : > { %v455_v43 = vmul.f32 %v454_v42, %v454_v42 }
 0x1ab   : > { %v457_v44 = vadd.f32 1.0, %v455_v43  ;;  %v687_v52 = vadd.f32 -1.0, %v455_v43 }
 0x1ad   : > { %812 = vrcp.f32 %v457_v44  ;;  %v469_v47 = vand.u32 2147483648, %v457_v44  ;;  %vm463_vm7 = vweird.f32 %v457_v44  ;;  %v467_v49 = vand.u32 2147483647, %v457_v44 }
 0x1af   : > { %v470_v51 = vor.u32 1.1754944e-38, %v469_v47  ;;  %vm468_vm10 = vcmp.eq.f32.partialorder %v467_v49, 8.507059e+37 }
 0x1b3   : > { %v813_v45 = vpop.eup %812 }
 0x1b4   : > { %v459_v46 = vmul.f32 %v813_v45, %v457_v44  ;;  %vm464_vm8 = vweird.f32 %v813_v45 }
 0x1b5   : > { %vm465_vm9 = vmor %vm463_vm7, %vm464_vm8 }
 0x1b6   : > { %v460_v48 = vsub.f32 1.0, %v459_v46  ;;  %v349_v46 = vld [vmem:[#allocation2] sm:$0xff] }
 0x1b8   : > { %v461_v50 = vmul.f32 %v813_v45, %v460_v48 }
 0x1ba   : > { %v462_v53 = vadd.f32 %v813_v45, %v461_v50 }
 0x1bc   : > { %v466_v54 = vsel %vm465_vm9, %v813_v45, %v462_v53 }
 0x1bd   : > { %v471_v55 = vsel %vm468_vm10, %v470_v51, %v466_v54 }
 0x1be   : > { %v472_v56 = vmul.f32 %v687_v52, %v471_v55 }
 0x1c0   : > { %v474_v57 = vmul.f32 %v472_v56, %v449_v38 }
 0x1c2   : > { %v475_v58 = vsel %vm473_vm11, %v449_v38, %v474_v57 }
 0x1c3   : > { %477 = vrot.lane.b32.xlu0 %v475_v58, %s937_s14 }
 0x201   : > { %v300_v60 = vpop.f32.mrf.mxu0 }
 0x202   : > { %v301_v61 = vadd.f32 %v300_v60, %v264_v59 }
 0x204   : > { %v303_v62 = vmin.f32 %v301_v61, 20.0  ;;  %vm325_vm0 = vcmp.gt.f32.partialorder %v301_v61, 20.0 }
 0x206   : > { %v304_v63 = vmul.f32 1.442695, %v303_v62 }
 0x208   : > { %814 = vpow2.f32 %v304_v63 }
 0x20e   : > { %v815_v0 = vpop.eup %814 }
 0x20f   : > { %v306_v1 = vadd.f32 1.0, %v815_v0 }
 0x211   : > { %v307_v2 = vmul.f32 %v306_v1, %v306_v1 }
 0x213   : > { %v309_v3 = vadd.f32 1.0, %v307_v2  ;;  %v677_v12 = vadd.f32 -1.0, %v307_v2 }
 0x215   : > { %816 = vrcp.f32 %v309_v3  ;;  %v321_v7 = vand.u32 2147483648, %v309_v3  ;;  %v319_v9 = vand.u32 2147483647, %v309_v3  ;;  %vm315_vm13 = vweird.f32 %v309_v3 }
 0x217   : > { %v322_v11 = vor.u32 1.1754944e-38, %v321_v7  ;;  %vm320_vm15 = vcmp.eq.f32.partialorder %v319_v9, 8.507059e+37 }
 0x21b   : > { %v817_v4 = vpop.eup %816 }
 0x21c   : > { %v311_v5 = vmul.f32 %v817_v4, %v309_v3  ;;  %vm316_vm12 = vweird.f32 %v817_v4 }
 0x21d   : > { %vm317_vm14 = vmor %vm315_vm13, %vm316_vm12 }
 0x21e   : > { %v312_v6 = vsub.f32 1.0, %v311_v5 }
 0x220   : > { %v313_v8 = vmul.f32 %v817_v4, %v312_v6 }
 0x222   : > { %v314_v10 = vadd.f32 %v817_v4, %v313_v8 }
 0x224   : > { %v318_v13 = vsel %vm317_vm14, %v817_v4, %v314_v10 }
 0x225   : > { %v323_v14 = vsel %vm320_vm15, %v322_v11, %v318_v13 }
 0x226   : > { %v324_v15 = vmul.f32 %v677_v12, %v323_v14 }
 0x228   : > { %v326_v16 = vmul.f32 %v324_v15, %v301_v61 }
 0x22a   : > { %v327_v17 = vsel %vm325_vm0, %v301_v61, %v326_v16 }
 0x22b   : > { %329 = vrot.lane.b32.xlu1 %v327_v17, %s937_s14 }
 0x235   : > { %v478_v18 = vpop.permute.xlu0 %477 }
 0x236   : > { %v480_v19 = vsel %vm332_vm3, 0.0, %v478_v18  ;;  %v481_v20 = vsel %vm332_vm3, %v478_v18, 0.0 }
 0x237   : > { %v794_v21 = vpack.i.bf16 %v481_v20, %v480_v19 }
 0x239   : > { %795 = vrot.lane.b32.xlu0 %v794_v21, %s933_s25  ;;  %790 = vrot.lane.b32.xlu2 %v794_v21, %s934_s26 }
 0x241   : > { %353 = vperm.xlu0 %809, %v350_v37  }
 0x293   : > { %v791_v22 = vpop.permute.xlu2 %790 }
 0x294   : > { %v793_v23 = vunpack.i.h.bf16 %v791_v22  ;;  %v792_v24 = vunpack.i.l.bf16 %v791_v22 }
 0x296   : > { %v494_v25 = vsel %vm257_vm2, %v792_v24, %v793_v23 }
 0x297   : > { %521 = vmatpush.msra.mxu3 %v494_v25 }
 0x29d   : > { %v330_v26 = vpop.permute.xlu1 %329 }
 0x29e   : > { %v333_v27 = vsel %vm332_vm3, 0.0, %v330_v26  ;;  %v334_v28 = vsel %vm332_vm3, %v330_v26, 0.0 }
 0x29f   : > { %v804_v29 = vpack.i.bf16 %v334_v28, %v333_v27 }
 0x2a1   : > { %805 = vrot.lane.b32.xlu2 %v804_v29, %s933_s25  ;;  %800 = vrot.lane.b32.xlu1 %v804_v29, %s934_s26  ;;  %s230_s25 = sand.u32 1, %s918_s19  }
 0x2a2   : > { %s674_s26 = sshll.u32 %s230_s25, 3  ;;  %s582_s22 = scalar_lea.sflag [#allocation4], %s230_s25 }
 0x2a3   : > { %s232_s9 = scalar_lea.vmem [#allocation5], %s674_s26 }
 0x2a4   : > { %s594_s10 = sshll.u32 %s232_s9, 4  ;;  %s595_s10 = int_to_ptr.vmem [resolvable:$true] %s594_s10 }
 0x2a9   : > { %502 = vperm.xlu1 %787, %v688_v30  }
 0x2ab   : > { %v796_v31 = vpop.permute.xlu0 %795 }
 0x2ac   : > { %v798_v32 = vunpack.i.h.bf16 %v796_v31  ;;  %v797_v33 = vunpack.i.l.bf16 %v796_v31 }
 0x2ae   : > { %v488_v34 = vsel %vm251_vm1, %v797_v33, %v798_v32 }
 0x2af   : > { %522 = vmatpush.msra.mxu3 %v488_v34 }
 0x2b1   : > { %690 = vmatpush.msk.msra.mxu3 %vm1072_vm4, %v478_v18 }
 0x2b2   : > { %691 = vmatmul.msk.f32.vlgmr.msra.gmra.mxu3 %vm279_vm6, %v497_v36 }
 0x2b3   : > { %v354_v56 = vpop.permute.xlu0 %353 }
 0x2fb   : > { %v806_v38 = vpop.permute.xlu2 %805 }
 0x2fc   : > { %v808_v40 = vunpack.i.h.bf16 %v806_v38  ;;  %v807_v41 = vunpack.i.l.bf16 %v806_v38 }
 0x2fe   : > { %v341_v45 = vsel %vm251_vm1, %v807_v41, %v808_v40 }
 0x313   : > { %v801_v39 = vpop.permute.xlu1 %800 }
 0x314   : > { %v803_v42 = vunpack.i.h.bf16 %v801_v39  ;;  %v802_v43 = vunpack.i.l.bf16 %v801_v39 }
 0x316   : > { %v347_v44 = vsel %vm257_vm2, %v802_v43, %v803_v42 }
 0x317   : > { %372 = vmatpush.msra.mxu1 %v347_v44 }
 0x319   : > { %373 = vmatpush.msra.mxu1 %v341_v45 }
 0x31b   : > { %679 = vmatpush.msk.msra.mxu1 %vm1072_vm4, %v330_v26  ;;  %v503_v48 = vpop.permute.xlu1 %502 }
 0x31c   : > { %680 = vmatmul.msk.f32.vlgmr.msra.gmra.mxu1 %vm279_vm6, %v349_v46 }
 0x335   : > { %v525_v47 = vpop.f32.mrf.mxu3 }
 0x336   : > { %v526_v49 = vadd.f32 %v525_v47, %v503_v48 }
 0x338   : > { %v528_v50 = vmin.f32 %v526_v49, 20.0  ;;  %vm550_vm11 = vcmp.gt.f32.partialorder %v526_v49, 20.0 }
 0x33a   : > { %v529_v51 = vmul.f32 1.442695, %v528_v50 }
 0x33c   : > { %818 = vpow2.f32 %v529_v51 }
 0x342   : > { %v819_v52 = vpop.eup %818 }
 0x343   : > { %v531_v53 = vadd.f32 1.0, %v819_v52 }
 0x345   : > { %v532_v54 = vmul.f32 %v531_v53, %v531_v53 }
 0x347   : > { %v534_v55 = vadd.f32 1.0, %v532_v54  ;;  %v692_v15 = vadd.f32 -1.0, %v532_v54 }
 0x349   : > { %820 = vrcp.f32 %v534_v55  ;;  %v546_v6 = vand.u32 2147483648, %v534_v55  ;;  %vm540_vm2 = vweird.f32 %v534_v55  ;;  %v544_v7 = vand.u32 2147483647, %v534_v55 }
 0x34b   : > { %v547_v11 = vor.u32 1.1754944e-38, %v546_v6  ;;  %vm545_vm6 = vcmp.eq.f32.partialorder %v544_v7, 8.507059e+37 }
 0x34f   : > { %v821_v61 = vpop.eup %820 }
 0x350   : > { %v536_v62 = vmul.f32 %v821_v61, %v534_v55  ;;  %vm541_vm1 = vweird.f32 %v821_v61 }
 0x351   : > { %vm542_vm5 = vmor %vm540_vm2, %vm541_vm1 }
 0x352   : > { %v537_v1 = vsub.f32 1.0, %v536_v62 }
 0x354   : > { %v538_v4 = vmul.f32 %v821_v61, %v537_v1 }
 0x356   : > { %v539_v5 = vadd.f32 %v821_v61, %v538_v4 }
 0x358   : > { %v543_v9 = vsel %vm542_vm5, %v821_v61, %v539_v5 }
 0x359   : > { %v548_v13 = vsel %vm545_vm6, %v547_v11, %v543_v9 }
 0x35a   : > { %v549_v18 = vmul.f32 %v692_v15, %v548_v13 }
 0x35c   : > { %v551_v24 = vmul.f32 %v549_v18, %v526_v49 }
 0x35e   : > { %v552_v27 = vsel %vm550_vm11, %v526_v49, %v551_v24 }
 0x399   : > { %v376_v57 = vpop.f32.mrf.mxu1 }
 0x39a   : > { %v377_v58 = vadd.f32 %v376_v57, %v354_v56 }
 0x39c   : > { %v379_v59 = vmin.f32 %v377_v58, 20.0  ;;  %vm401_vm12 = vcmp.gt.f32.partialorder %v377_v58, 20.0 }
 0x39e   : > { %v380_v60 = vmul.f32 1.442695, %v379_v59 }
 0x3a0   : > { %822 = vpow2.f32 %v380_v60 }
 0x3a6   : > { %v823_v63 = vpop.eup %822 }
 0x3a7   : > { %v382_v0 = vadd.f32 1.0, %v823_v63 }
 0x3a9   : > { %v383_v2 = vmul.f32 %v382_v0, %v382_v0 }
 0x3ab   : > { %v385_v3 = vadd.f32 1.0, %v383_v2  ;;  %v681_v21 = vadd.f32 -1.0, %v383_v2 }
 0x3ad   : > { %824 = vrcp.f32 %v385_v3  ;;  %v397_v14 = vand.u32 2147483648, %v385_v3  ;;  %v395_v17 = vand.u32 2147483647, %v385_v3  ;;  %vm391_vm8 = vweird.f32 %v385_v3 }
 0x3af   : > { %v398_v20 = vor.u32 1.1754944e-38, %v397_v14  ;;  %vm396_vm10 = vcmp.eq.f32.partialorder %v395_v17, 8.507059e+37 }
 0x3b3   : > { %v825_v8 = vpop.eup %824 }
 0x3b4   : > { %v387_v10 = vmul.f32 %v825_v8, %v385_v3  ;;  %vm392_vm7 = vweird.f32 %v825_v8 }
 0x3b5   : > { %vm393_vm9 = vmor %vm391_vm8, %vm392_vm7 }
 0x3b6   : > { %v388_v12 = vsub.f32 1.0, %v387_v10 }
 0x3b8   : > { %v389_v16 = vmul.f32 %v825_v8, %v388_v12 }
 0x3ba   : > { %v390_v19 = vadd.f32 %v825_v8, %v389_v16 }
 0x3bc   : > { %v394_v22 = vsel %vm393_vm9, %v825_v8, %v390_v19 }
 0x3bd   : > { %v399_v23 = vsel %vm396_vm10, %v398_v20, %v394_v22 }
 0x3be   : > { %v400_v25 = vmul.f32 %v681_v21, %v399_v23 }
 0x3c0   : > { %v402_v26 = vmul.f32 %v400_v25, %v377_v58 }
 0x3c2   : > { %v403_v28 = vsel %vm401_vm12, %v377_v58, %v402_v26 }
 0x3c3   : > { %v553_v29 = vadd.f32 %v552_v27, %v403_v28 }
 0x3c5   : > { %v554_v30 = vmul.f32 0.5, %v553_v29 }
 0x3c7   : > { %v555_v31 = vmin.f32 %v554_v30, 20.0  ;;  %vm577_vm3 = vcmp.gt.f32.partialorder %v554_v30, 20.0 }
 0x3c9   : > { %v556_v32 = vmul.f32 1.442695, %v555_v31 }
 0x3cb   : > { %826 = vpow2.f32 %v556_v32 }
 0x3d1   : > { %v827_v33 = vpop.eup %826 }
 0x3d2   : > { %v558_v34 = vadd.f32 1.0, %v827_v33 }
 0x3d4   : > { %v559_v35 = vmul.f32 %v558_v34, %v558_v34 }
 0x3d6   : > { %v561_v36 = vadd.f32 1.0, %v559_v35  ;;  %v693_v45 = vadd.f32 -1.0, %v559_v35 }
 0x3d8   : > { %828 = vrcp.f32 %v561_v36  ;;  %v573_v40 = vand.u32 2147483648, %v561_v36  ;;  %v571_v42 = vand.u32 2147483647, %v561_v36  ;;  %vm567_vm14 = vweird.f32 %v561_v36 }
 0x3da   : > { %v574_v44 = vor.u32 1.1754944e-38, %v573_v40  ;;  %vm572_vm0 = vcmp.eq.f32.partialorder %v571_v42, 8.507059e+37 }
 0x3de   : > { %v829_v37 = vpop.eup %828 }
 0x3df   : > { %v563_v38 = vmul.f32 %v829_v37, %v561_v36  ;;  %vm568_vm13 = vweird.f32 %v829_v37 }
 0x3e0   : > { %vm569_vm15 = vmor %vm567_vm14, %vm568_vm13 }
 0x3e1   : > { %v564_v39 = vsub.f32 1.0, %v563_v38 }
 0x3e3   : > { %v565_v41 = vmul.f32 %v829_v37, %v564_v39 }
 0x3e5   : > { %v566_v43 = vadd.f32 %v829_v37, %v565_v41 }
 0x3e7   : > { %v570_v46 = vsel %vm569_vm15, %v829_v37, %v566_v43 }
 0x3e8   : > { %v575_v47 = vsel %vm572_vm0, %v574_v44, %v570_v46 }
 0x3e9   : > { %v576_v48 = vmul.f32 %v693_v45, %v575_v47 }
 0x3eb   : > { %v578_v49 = vmul.f32 %v576_v48, %v554_v30 }
 0x3ed   : > { %v579_v50 = vsel %vm577_vm3, %v554_v30, %v578_v49 }
 0x3ee   : > { %580 = vst [vmem:[%s232_s9] sm:$0xff] %v579_v50 }
 0x3ef   : > { %887 = shalt.err (!%p884_p8)
}
 0x3f0   : > { %702 = dma.vmem_to_hbm [thread:$0]  (%p1006_p5), %s595_s10, 128, %s597_s11, %s582_s22  }
 0x3f1 PF: > { %p714_p9 = scmp.ge.s32.totalorder %s926_s21, 2  ;;  %s608_s25 = sand.u32 1, %s914_s18  }
 0x3f2   : > { %s609_s26 = scalar_lea.sflag [#allocation4], %s608_s25 }
 0x3f3   : > { %p709_p10 = pnand %p714_p9, %p1010_p6 }
 0x3f5   : > { %p710_p11 = pneg %p709_p10 }
 0x3f7   : > { %909 = dma.done.wait (%p710_p11), %s609_s26, 128  }
 0x3f8   : > { %911 = vsyncadd (%p710_p11), %s609_s26, 4294967168  ;;  %p16_p12 = scmp.ge.s32.totalorder %s993_s24, 4   ;;  %s1129_s18 = smov %s918_s19 }
 0x3f9   : > { %s1130_s19 = smov %s922_s20  ;;  %s1131_s20 = smov %s1004_s27 }
 0x3fa   : > { %s1132_s21 = smov %s993_s24  ;;  %18 = sbr.rel (!%p16_p12) target bundleno = 4 (0x4), region = 84 }
 0x3ff   :  { %615 = vsyncpa [#allocation3], 1 }
 0x400   :  { %617 = vsyncpa [#allocation3 + $0x1], 1 }
 0x401   :  { %618 = vsyncpa [#allocation4], 1 }
 0x402   :  { %620 = vsyncpa [#allocation4 + $0x1], 1 }

</bundles_post_ra>
